<compile_context>
chip_gen: v5e
topology: v5e:2x2
jax: 0.10.0
libtpu: 0.0.40
codegen_flags: <defaults>
</compile_context>

<pallas_src>
import functools

import jax
import jax.numpy as jnp
from jax.experimental import pallas as pl
from jax.experimental.pallas import tpu as pltpu


def _round_up(x, m):
    return ((x + m - 1) // m) * m


# ----------------------------------------------------------------------------
# Kernel
# ----------------------------------------------------------------------------
def _vae_kernel(input_dim, latent_dim, use_nbrs, compute_dtype, *refs):
    if use_nbrs:
        (x_ref, munb_ref, eps_ref,
         we0, be0, we1, be1, wml, bml, wcv,
         wd0, bd0, wd1, bd1, wd2, bd2, out_ref) = refs
    else:
        (x_ref, eps_ref,
         we0, be0, we1, be1, wml, bml,
         wd0, bd0, wd1, bd1, wd2, bd2, out_ref) = refs
        munb_ref = None
        wcv = None

    cd = compute_dtype

    def mm(a, w_ref):
        # bf16 (or f32) MXU operands, f32 accumulation.
        return jnp.dot(a.astype(cd), w_ref[...],
                       preferred_element_type=jnp.float32)

    x = x_ref[...]

    # ---- Encoder: Linear+ReLU, Linear+ReLU (elementwise math in f32) --------
    h = jnp.maximum(mm(x, we0) + be0[...], 0.0)
    h = jnp.maximum(mm(h, we1) + be1[...], 0.0)

    # ---- Fused mu/logvar head: one (enc_dim, 2*latent) matmul ---------------
    ml = mm(h, wml) + bml[...]
    mu = ml[:, :latent_dim]
    logvar = ml[:, latent_dim:]

    # ---- mu_ast: project flattened neighbor mus (no bias) or plain mu -------
    if use_nbrs:
        mu_ast = mm(munb_ref[...], wcv)
    else:
        mu_ast = mu

    # ---- Reparameterize: z = mu_ast + eps * exp(0.5 * logvar) ---------------
    z = mu_ast + eps_ref[...] * jnp.exp(0.5 * logvar)

    # ---- Decoder: Linear+ReLU, Linear+ReLU, Linear ---------------------------
    d = jnp.maximum(mm(z, wd0) + bd0[...], 0.0)
    d = jnp.maximum(mm(d, wd1) + bd1[...], 0.0)
    recon = mm(d, wd2) + bd2[...]

    # ---- Lane-dense output slab: [recon | z | mu_ast | logvar | zero pad] ---
    D, L = input_dim, latent_dim
    out_ref[:, 0:D] = recon
    out_ref[:, D:D + L] = z
    out_ref[:, D + L:D + 2 * L] = mu_ast
    out_ref[:, D + 2 * L:D + 3 * L] = logvar
    pad = out_ref.shape[-1] - (D + 3 * L)
    if pad:  # static
        out_ref[:, D + 3 * L:] = jnp.zeros((out_ref.shape[0], pad), jnp.float32)


# ----------------------------------------------------------------------------
# One-time parameter preparation (hoisted out of the per-call wrapper)
# ----------------------------------------------------------------------------
def prepare_params(raw_params, compute_dtype=jnp.bfloat16):
    """Transpose torch (out,in) Linear weights to (in,out), fuse the mu/logvar
    heads into one weight/bias, cast matmul weights to the MXU compute dtype,
    and keep biases in f32.  Call once; reuse the result for every forward."""
    cd = compute_dtype

    def wT(name):
        return jnp.asarray(raw_params[name], jnp.float32).T.astype(cd)

    def b2d(name):
        return jnp.asarray(raw_params[name], jnp.float32)[None, :]

    p = {}
    p["we0"], p["be0"] = wT("enc0_w"), b2d("enc0_b")
    p["we1"], p["be1"] = wT("enc1_w"), b2d("enc1_b")
    p["wml"] = jnp.concatenate([wT("fc_mu_w"), wT("fc_logvar_w")], axis=1)
    p["bml"] = jnp.concatenate([b2d("fc_mu_b"), b2d("fc_logvar_b")], axis=1)
    p["wcv"] = wT("convert_w")                       # no bias
    p["wd0"], p["bd0"] = wT("dec0_w"), b2d("dec0_b")
    p["wd1"], p["bd1"] = wT("dec1_w"), b2d("dec1_b")
    p["wd2"], p["bd2"] = wT("dec2_w"), b2d("dec2_b")
    return p


def _choose_tile_b(B, max_tile=512):
    # Whole batch in a single grid step whenever it fits comfortably; otherwise
    # the largest 8-aligned divisor <= max_tile.  (Re-derive max_tile against
    # v7x's 64 MiB VMEM if feature dims grow large.)
    if B <= max_tile:
        return B
    for t in range(max_tile, 7, -1):
        if B % t == 0 and t % 8 == 0:
            return t
    return B


# ----------------------------------------------------------------------------
# Forward wrapper
# ----------------------------------------------------------------------------
def vae_forward(params, x, mu_nbrs=None, eps=None, *, tile_b=None):
    """Pallas implementation of VAE.forward.

    params:  output of prepare_params() (pre-transposed / fused / bf16 weights)
    x:       (B, input_dim) float32
    mu_nbrs: optional (m, B, latent_dim) float32
    eps:     (B, latent_dim) float32 -- the N(0,1) draw of reparameterize.
             Must be supplied explicitly (torch uses randn_like internally).
    Returns (reconstructed, z, mu_ast, logvar).
    """
    # TODO(synk): psi_filtered_indices weight filtering mutates the
    # convert_mu_nbrs weight shape at call time; not supported in this kernel.
    if eps is None:
        raise ValueError("eps (the N(0,1) reparameterization draw) must be "
                         "passed explicitly; it is not silently defaulted.")

    B, input_dim = x.shape
    latent_dim = params["wml"].shape[1] // 2
    cd = params["we0"].dtype
    use_nbrs = mu_nbrs is not None

    x = x.astype(cd)
    eps = jnp.asarray(eps, jnp.float32)

    if tile_b is None:
        tile_b = _choose_tile_b(B)
    assert B % tile_b == 0, "batch must be divisible by tile_b"
    grid = (B // tile_b,)

    def row_spec(ncols):
        return pl.BlockSpec((tile_b, ncols), lambda i: (i, 0))

    def const_spec(arr):
        # Constant index_map: the pipeline DMAs these only once even when the
        # batch grid has multiple steps.
        return pl.BlockSpec(arr.shape, lambda i: (0, 0))

    data_args = [x]
    data_specs = [row_spec(input_dim)]
    if use_nbrs:
        m = mu_nbrs.shape[0]
        # torch: mu_nbrs.permute(1, 0, 2).reshape(batch, latent*m)
        munb = jnp.transpose(mu_nbrs, (1, 0, 2)).reshape(B, latent_dim * m)
        data_args.append(munb.astype(cd))
        data_specs.append(row_spec(latent_dim * m))
    data_args.append(eps)
    data_specs.append(row_spec(latent_dim))

    weight_names = ["we0", "be0", "we1", "be1", "wml", "bml"]
    if use_nbrs:
        weight_names.append("wcv")
    weight_names += ["wd0", "bd0", "wd1", "bd1", "wd2", "bd2"]
    weight_args = [params[n] for n in weight_names]
    weight_specs = [const_spec(a) for a in weight_args]

    out_w = _round_up(input_dim + 3 * latent_dim, 128)
    out_shape = jax.ShapeDtypeStruct((B, out_w), jnp.float32)
    out_spec = row_spec(out_w)

    kernel = functools.partial(_vae_kernel, input_dim, latent_dim, use_nbrs, cd)

    slab = pl.pallas_call(
        kernel,
        grid=grid,
        in_specs=data_specs + weight_specs,
        out_specs=out_spec,
        out_shape=out_shape,
        compiler_params=pltpu.CompilerParams(
            dimension_semantics=("parallel",)),
    )(*data_args, *weight_args)

    D, L = input_dim, latent_dim
    recon = slab[:, :D]
    z = slab[:, D:D + L]
    mu_ast = slab[:, D + L:D + 2 * L]
    logvar = slab[:, D + 2 * L:D + 3 * L]
    return recon, z, mu_ast, logvar


# ----------------------------------------------------------------------------
# Deterministic parameter init (shapes match the torch module's __init__)
# ----------------------------------------------------------------------------
def init_params(key, input_dim, latent_dim, psi_M, encoder_dims, decoder_dims):
    def linear(key, in_dim, out_dim, bias=True):
        kw, kb = jax.random.split(key)
        bound = 1.0 / jnp.sqrt(in_dim)
        w = jax.random.uniform(kw, (out_dim, in_dim), jnp.float32, -bound, bound)
        b = (jax.random.uniform(kb, (out_dim,), jnp.float32, -bound, bound)
             if bias else None)
        return w, b

    keys = jax.random.split(key, 8)
    p = {}
    p["enc0_w"], p["enc0_b"] = linear(keys[0], input_dim, encoder_dims[0])
    p["enc1_w"], p["enc1_b"] = linear(keys[1], encoder_dims[0], encoder_dims[1])
    p["fc_mu_w"], p["fc_mu_b"] = linear(keys[2], encoder_dims[-1], latent_dim)
    p["fc_logvar_w"], p["fc_logvar_b"] = linear(keys[3], encoder_dims[-1], latent_dim)
    p["convert_w"], _ = linear(keys[4], latent_dim * psi_M, latent_dim, bias=False)
    p["dec0_w"], p["dec0_b"] = linear(keys[5], latent_dim, decoder_dims[0])
    p["dec1_w"], p["dec1_b"] = linear(keys[6], decoder_dims[0], decoder_dims[1])
    p["dec2_w"], p["dec2_b"] = linear(keys[7], decoder_dims[1], input_dim)
    return p


# ----------------------------------------------------------------------------
# Pure-JAX reference (torch-Linear-layout params).  If compute_dtype is given,
# matmul operands are cast exactly like the kernel (bf16 in, f32 accumulate),
# so the comparison against the kernel can be tight.
# ----------------------------------------------------------------------------
def vae_forward_ref(params, x, mu_nbrs, eps, compute_dtype=None):
    cd = compute_dtype

    def lin(a, wname, bname=None):
        w = params[wname].T
        if cd is not None:
            a = a.astype(cd)
            w = w.astype(cd)
        y = jnp.dot(a, w, preferred_element_type=jnp.float32)
        if bname is not None:
            y = y + params[bname]
        return y

    h = jax.nn.relu(lin(x, "enc0_w", "enc0_b"))
    h = jax.nn.relu(lin(h, "enc1_w", "enc1_b"))
    mu = lin(h, "fc_mu_w", "fc_mu_b")
    logvar = lin(h, "fc_logvar_w", "fc_logvar_b")
    if mu_nbrs is not None:
        m, B, L = mu_nbrs.shape
        munb = jnp.transpose(mu_nbrs, (1, 0, 2)).reshape(B, L * m)
        mu_ast = lin(munb, "convert_w")
    else:
        mu_ast = mu
    z = mu_ast + eps * jnp.exp(0.5 * logvar)
    d = jax.nn.relu(lin(z, "dec0_w", "dec0_b"))
    d = jax.nn.relu(lin(d, "dec1_w", "dec1_b"))
    recon = lin(d, "dec2_w", "dec2_b")
    return recon, z, mu_ast, logvar


# ----------------------------------------------------------------------------
if __name__ == "__main__":
    # Small shapes consistent with the module's forward.
    input_dim = 32
    latent_dim = 16
    psi_M = 4
    encoder_dims = [64, 32]
    decoder_dims = [32, 64]
    B = 16

    root = jax.random.PRNGKey(0)
    k_params, k_x, k_nbrs, k_eps = jax.random.split(root, 4)

    raw = init_params(k_params, input_dim, latent_dim, psi_M,
                      encoder_dims, decoder_dims)
    x = jax.random.normal(k_x, (B, input_dim), jnp.float32)
    mu_nbrs = jax.random.normal(k_nbrs, (psi_M, B, latent_dim), jnp.float32)
    # eps plays the role of torch.randn_like(std) in reparameterize.
    eps = jax.random.normal(k_eps, (B, latent_dim), jnp.float32)

    # One-time weight prep (transpose + head fusion + bf16 cast), then jit.
    prepared = prepare_params(raw, compute_dtype=jnp.bfloat16)
    fwd = jax.jit(vae_forward)

    # --- neighbor path --------------------------------------------------------
    out = fwd(prepared, x, mu_nbrs, eps)
    jax.block_until_ready(out)

    # Tight check vs. a reference using the same bf16-operand / f32-accum dots.
    ref_same = vae_forward_ref(raw, x, mu_nbrs, eps, compute_dtype=jnp.bfloat16)
    for got, want in zip(out, ref_same):
        assert jnp.allclose(got, want, atol=2e-3, rtol=2e-3), \
            "mismatch vs matched-precision reference"

    # Loose sanity check vs. the full-f32 reference (bf16 MXU operands cannot
    # meet a 1e-5 tolerance).
    ref_f32 = vae_forward_ref(raw, x, mu_nbrs, eps, compute_dtype=None)
    for got, want in zip(out, ref_f32):
        assert jnp.allclose(got, want, atol=1e-1, rtol=1e-1), \
            "mismatch vs f32 reference"

    # --- no-neighbor path (specialized signature: no munb / convert weight) ---
    out2 = fwd(prepared, x, None, eps)
    jax.block_until_ready(out2)
    ref2 = vae_forward_ref(raw, x, None, eps, compute_dtype=jnp.bfloat16)
    for got, want in zip(out2, ref2):
        assert jnp.allclose(got, want, atol=2e-3, rtol=2e-3), \
            "mismatch vs matched-precision reference (no nbrs)"

    print("KERNEL_OK")
</pallas_src>

<mosaic_0001>
module attributes {stable_mosaic.version = 11 : i64} {
  func.func @_vae_kernel(%arg0: i32, %arg1: memref<16x32xbf16, #tpu.memory_space<vmem>>, %arg2: memref<16x64xbf16, #tpu.memory_space<vmem>>, %arg3: memref<16x16xf32, #tpu.memory_space<vmem>>, %arg4: memref<32x64xbf16, #tpu.memory_space<vmem>>, %arg5: memref<1x64xf32, #tpu.memory_space<vmem>>, %arg6: memref<64x32xbf16, #tpu.memory_space<vmem>>, %arg7: memref<1x32xf32, #tpu.memory_space<vmem>>, %arg8: memref<32x32xbf16, #tpu.memory_space<vmem>>, %arg9: memref<1x32xf32, #tpu.memory_space<vmem>>, %arg10: memref<64x16xbf16, #tpu.memory_space<vmem>>, %arg11: memref<16x32xbf16, #tpu.memory_space<vmem>>, %arg12: memref<1x32xf32, #tpu.memory_space<vmem>>, %arg13: memref<32x64xbf16, #tpu.memory_space<vmem>>, %arg14: memref<1x64xf32, #tpu.memory_space<vmem>>, %arg15: memref<64x32xbf16, #tpu.memory_space<vmem>>, %arg16: memref<1x32xf32, #tpu.memory_space<vmem>>, %arg17: memref<16x128xf32, #tpu.memory_space<vmem>>) attributes {dimension_semantics = [#tpu.dimension_semantics<parallel>], iteration_bounds = array<i64: 1>, scalar_prefetch = 0 : i64, scratch_operands = 0 : i64, tpu.core_type = #tpu.core_type<tc>, window_params = [{transform_indices = @transform_0, window_bounds = array<i64: 16, 32>}, {transform_indices = @transform_1, window_bounds = array<i64: 16, 64>}, {transform_indices = @transform_2, window_bounds = array<i64: 16, 16>}, {pipeline_mode = #tpu.pipeline_mode<synchronous>, transform_indices = @transform_3, window_bounds = array<i64: 32, 64>}, {pipeline_mode = #tpu.pipeline_mode<synchronous>, transform_indices = @transform_4, window_bounds = array<i64: 1, 64>}, {pipeline_mode = #tpu.pipeline_mode<synchronous>, transform_indices = @transform_5, window_bounds = array<i64: 64, 32>}, {pipeline_mode = #tpu.pipeline_mode<synchronous>, transform_indices = @transform_6, window_bounds = array<i64: 1, 32>}, {pipeline_mode = #tpu.pipeline_mode<synchronous>, transform_indices = @transform_7, window_bounds = array<i64: 32, 32>}, {pipeline_mode = #tpu.pipeline_mode<synchronous>, transform_indices = @transform_8, window_bounds = array<i64: 1, 32>}, {pipeline_mode = #tpu.pipeline_mode<synchronous>, transform_indices = @transform_9, window_bounds = array<i64: 64, 16>}, {pipeline_mode = #tpu.pipeline_mode<synchronous>, transform_indices = @transform_10, window_bounds = array<i64: 16, 32>}, {pipeline_mode = #tpu.pipeline_mode<synchronous>, transform_indices = @transform_11, window_bounds = array<i64: 1, 32>}, {pipeline_mode = #tpu.pipeline_mode<synchronous>, transform_indices = @transform_12, window_bounds = array<i64: 32, 64>}, {pipeline_mode = #tpu.pipeline_mode<synchronous>, transform_indices = @transform_13, window_bounds = array<i64: 1, 64>}, {pipeline_mode = #tpu.pipeline_mode<synchronous>, transform_indices = @transform_14, window_bounds = array<i64: 64, 32>}, {pipeline_mode = #tpu.pipeline_mode<synchronous>, transform_indices = @transform_15, window_bounds = array<i64: 1, 32>}, {transform_indices = @transform_16, window_bounds = array<i64: 16, 128>}]} {
    %c0 = arith.constant 0 : index
    %c0_0 = arith.constant 0 : index
    %0 = vector.load %arg1[%c0, %c0_0] : memref<16x32xbf16, #tpu.memory_space<vmem>>, vector<16x32xbf16>
    %c0_1 = arith.constant 0 : index
    %c0_2 = arith.constant 0 : index
    %1 = vector.load %arg4[%c0_1, %c0_2] : memref<32x64xbf16, #tpu.memory_space<vmem>>, vector<32x64xbf16>
    %cst = arith.constant dense<0.000000e+00> : vector<16x64xf32>
    %2 = tpu.matmul %0, %1, %cst {dimension_numbers = #tpu.dot_dimension_numbers<[1], [0], [0], [1], [0, 0, 1, 1], [], []>} : vector<16x32xbf16>, vector<32x64xbf16>, vector<16x64xf32> -> vector<16x64xf32>
    %c0_3 = arith.constant 0 : index
    %c0_4 = arith.constant 0 : index
    %3 = vector.load %arg5[%c0_3, %c0_4] : memref<1x64xf32, #tpu.memory_space<vmem>>, vector<1x64xf32>
    %4 = vector.broadcast %3 : vector<1x64xf32> to vector<16x64xf32>
    %5 = arith.addf %2, %4 : vector<16x64xf32>
    %cst_5 = arith.constant 0.000000e+00 : f32
    %6 = vector.broadcast %cst_5 : f32 to vector<16x64xf32>
    %7 = arith.maximumf %5, %6 : vector<16x64xf32>
    %8 = arith.truncf %7 : vector<16x64xf32> to vector<16x64xbf16>
    %c0_6 = arith.constant 0 : index
    %c0_7 = arith.constant 0 : index
    %9 = vector.load %arg6[%c0_6, %c0_7] : memref<64x32xbf16, #tpu.memory_space<vmem>>, vector<64x32xbf16>
    %cst_8 = arith.constant dense<0.000000e+00> : vector<16x32xf32>
    %10 = tpu.matmul %8, %9, %cst_8 {dimension_numbers = #tpu.dot_dimension_numbers<[1], [0], [0], [1], [0, 0, 1, 1], [], []>} : vector<16x64xbf16>, vector<64x32xbf16>, vector<16x32xf32> -> vector<16x32xf32>
    %c0_9 = arith.constant 0 : index
    %c0_10 = arith.constant 0 : index
    %11 = vector.load %arg7[%c0_9, %c0_10] : memref<1x32xf32, #tpu.memory_space<vmem>>, vector<1x32xf32>
    %12 = vector.broadcast %11 : vector<1x32xf32> to vector<16x32xf32>
    %13 = arith.addf %10, %12 : vector<16x32xf32>
    %cst_11 = arith.constant 0.000000e+00 : f32
    %14 = vector.broadcast %cst_11 : f32 to vector<16x32xf32>
    %15 = arith.maximumf %13, %14 : vector<16x32xf32>
    %16 = arith.truncf %15 : vector<16x32xf32> to vector<16x32xbf16>
    %c0_12 = arith.constant 0 : index
    %c0_13 = arith.constant 0 : index
    %17 = vector.load %arg8[%c0_12, %c0_13] : memref<32x32xbf16, #tpu.memory_space<vmem>>, vector<32x32xbf16>
    %cst_14 = arith.constant dense<0.000000e+00> : vector<16x32xf32>
    %18 = tpu.matmul %16, %17, %cst_14 {dimension_numbers = #tpu.dot_dimension_numbers<[1], [0], [0], [1], [0, 0, 1, 1], [], []>} : vector<16x32xbf16>, vector<32x32xbf16>, vector<16x32xf32> -> vector<16x32xf32>
    %c0_15 = arith.constant 0 : index
    %c0_16 = arith.constant 0 : index
    %19 = vector.load %arg9[%c0_15, %c0_16] : memref<1x32xf32, #tpu.memory_space<vmem>>, vector<1x32xf32>
    %20 = vector.broadcast %19 : vector<1x32xf32> to vector<16x32xf32>
    %21 = arith.addf %18, %20 : vector<16x32xf32>
    %22 = vector.extract_strided_slice %21 {offsets = [0, 16], sizes = [16, 16], strides = [1, 1]} : vector<16x32xf32> to vector<16x16xf32>
    %c0_17 = arith.constant 0 : index
    %c0_18 = arith.constant 0 : index
    %23 = vector.load %arg2[%c0_17, %c0_18] : memref<16x64xbf16, #tpu.memory_space<vmem>>, vector<16x64xbf16>
    %c0_19 = arith.constant 0 : index
    %c0_20 = arith.constant 0 : index
    %24 = vector.load %arg10[%c0_19, %c0_20] : memref<64x16xbf16, #tpu.memory_space<vmem>>, vector<64x16xbf16>
    %cst_21 = arith.constant dense<0.000000e+00> : vector<16x16xf32>
    %25 = tpu.matmul %23, %24, %cst_21 {dimension_numbers = #tpu.dot_dimension_numbers<[1], [0], [0], [1], [0, 0, 1, 1], [], []>} : vector<16x64xbf16>, vector<64x16xbf16>, vector<16x16xf32> -> vector<16x16xf32>
    %c0_22 = arith.constant 0 : index
    %c0_23 = arith.constant 0 : index
    %26 = vector.load %arg3[%c0_22, %c0_23] : memref<16x16xf32, #tpu.memory_space<vmem>>, vector<16x16xf32>
    %cst_24 = arith.constant 5.000000e-01 : f32
    %27 = vector.broadcast %cst_24 : f32 to vector<16x16xf32>
    %28 = arith.mulf %27, %22 : vector<16x16xf32>
    %29 = math.exp %28 : vector<16x16xf32>
    %30 = arith.mulf %26, %29 : vector<16x16xf32>
    %31 = arith.addf %25, %30 : vector<16x16xf32>
    %32 = arith.truncf %31 : vector<16x16xf32> to vector<16x16xbf16>
    %c0_25 = arith.constant 0 : index
    %c0_26 = arith.constant 0 : index
    %33 = vector.load %arg11[%c0_25, %c0_26] : memref<16x32xbf16, #tpu.memory_space<vmem>>, vector<16x32xbf16>
    %cst_27 = arith.constant dense<0.000000e+00> : vector<16x32xf32>
    %34 = tpu.matmul %32, %33, %cst_27 {dimension_numbers = #tpu.dot_dimension_numbers<[1], [0], [0], [1], [0, 0, 1, 1], [], []>} : vector<16x16xbf16>, vector<16x32xbf16>, vector<16x32xf32> -> vector<16x32xf32>
    %c0_28 = arith.constant 0 : index
    %c0_29 = arith.constant 0 : index
    %35 = vector.load %arg12[%c0_28, %c0_29] : memref<1x32xf32, #tpu.memory_space<vmem>>, vector<1x32xf32>
    %36 = vector.broadcast %35 : vector<1x32xf32> to vector<16x32xf32>
    %37 = arith.addf %34, %36 : vector<16x32xf32>
    %cst_30 = arith.constant 0.000000e+00 : f32
    %38 = vector.broadcast %cst_30 : f32 to vector<16x32xf32>
    %39 = arith.maximumf %37, %38 : vector<16x32xf32>
    %40 = arith.truncf %39 : vector<16x32xf32> to vector<16x32xbf16>
    %c0_31 = arith.constant 0 : index
    %c0_32 = arith.constant 0 : index
    %41 = vector.load %arg13[%c0_31, %c0_32] : memref<32x64xbf16, #tpu.memory_space<vmem>>, vector<32x64xbf16>
    %cst_33 = arith.constant dense<0.000000e+00> : vector<16x64xf32>
    %42 = tpu.matmul %40, %41, %cst_33 {dimension_numbers = #tpu.dot_dimension_numbers<[1], [0], [0], [1], [0, 0, 1, 1], [], []>} : vector<16x32xbf16>, vector<32x64xbf16>, vector<16x64xf32> -> vector<16x64xf32>
    %c0_34 = arith.constant 0 : index
    %c0_35 = arith.constant 0 : index
    %43 = vector.load %arg14[%c0_34, %c0_35] : memref<1x64xf32, #tpu.memory_space<vmem>>, vector<1x64xf32>
    %44 = vector.broadcast %43 : vector<1x64xf32> to vector<16x64xf32>
    %45 = arith.addf %42, %44 : vector<16x64xf32>
    %cst_36 = arith.constant 0.000000e+00 : f32
    %46 = vector.broadcast %cst_36 : f32 to vector<16x64xf32>
    %47 = arith.maximumf %45, %46 : vector<16x64xf32>
    %48 = arith.truncf %47 : vector<16x64xf32> to vector<16x64xbf16>
    %c0_37 = arith.constant 0 : index
    %c0_38 = arith.constant 0 : index
    %49 = vector.load %arg15[%c0_37, %c0_38] : memref<64x32xbf16, #tpu.memory_space<vmem>>, vector<64x32xbf16>
    %cst_39 = arith.constant dense<0.000000e+00> : vector<16x32xf32>
    %50 = tpu.matmul %48, %49, %cst_39 {dimension_numbers = #tpu.dot_dimension_numbers<[1], [0], [0], [1], [0, 0, 1, 1], [], []>} : vector<16x64xbf16>, vector<64x32xbf16>, vector<16x32xf32> -> vector<16x32xf32>
    %c0_40 = arith.constant 0 : index
    %c0_41 = arith.constant 0 : index
    %51 = vector.load %arg16[%c0_40, %c0_41] : memref<1x32xf32, #tpu.memory_space<vmem>>, vector<1x32xf32>
    %52 = vector.broadcast %51 : vector<1x32xf32> to vector<16x32xf32>
    %53 = arith.addf %50, %52 : vector<16x32xf32>
    %c0_42 = arith.constant 0 : index
    %c0_43 = arith.constant 0 : index
    %54 = vector.load %arg17[%c0_42, %c0_43] : memref<16x128xf32, #tpu.memory_space<vmem>>, vector<16x32xf32>
    tpu.vector_store %arg17[%c0_42, %c0_43], %53 {strides = array<i32>} : memref<16x128xf32, #tpu.memory_space<vmem>>, vector<16x32xf32>,
    %c0_44 = arith.constant 0 : index
    %c32 = arith.constant 32 : index
    %55 = vector.load %arg17[%c0_44, %c32] : memref<16x128xf32, #tpu.memory_space<vmem>>, vector<16x16xf32>
    tpu.vector_store %arg17[%c0_44, %c32], %31 {strides = array<i32>} : memref<16x128xf32, #tpu.memory_space<vmem>>, vector<16x16xf32>,
    %c0_45 = arith.constant 0 : index
    %c48 = arith.constant 48 : index
    %56 = vector.load %arg17[%c0_45, %c48] : memref<16x128xf32, #tpu.memory_space<vmem>>, vector<16x16xf32>
    tpu.vector_store %arg17[%c0_45, %c48], %25 {strides = array<i32>} : memref<16x128xf32, #tpu.memory_space<vmem>>, vector<16x16xf32>,
    %c0_46 = arith.constant 0 : index
    %c64 = arith.constant 64 : index
    %57 = vector.load %arg17[%c0_46, %c64] : memref<16x128xf32, #tpu.memory_space<vmem>>, vector<16x16xf32>
    tpu.vector_store %arg17[%c0_46, %c64], %22 {strides = array<i32>} : memref<16x128xf32, #tpu.memory_space<vmem>>, vector<16x16xf32>,
    %cst_47 = arith.constant 0.000000e+00 : f32
    %58 = vector.broadcast %cst_47 : f32 to vector<16x48xf32>
    %c0_48 = arith.constant 0 : index
    %c80 = arith.constant 80 : index
    %59 = vector.load %arg17[%c0_48, %c80] : memref<16x128xf32, #tpu.memory_space<vmem>>, vector<16x48xf32>
    tpu.vector_store %arg17[%c0_48, %c80], %58 {strides = array<i32>} : memref<16x128xf32, #tpu.memory_space<vmem>>, vector<16x48xf32>,
    return
  }
  func.func @transform_0(%arg0: i32) -> (i32, i32) {
    %c0_i32 = arith.constant 0 : i32
    %c0_i32_0 = arith.constant 0 : i32
    return %arg0, %c0_i32 : i32, i32
  }
  func.func @transform_1(%arg0: i32) -> (i32, i32) {
    %c0_i32 = arith.constant 0 : i32
    %c0_i32_0 = arith.constant 0 : i32
    return %arg0, %c0_i32 : i32, i32
  }
  func.func @transform_2(%arg0: i32) -> (i32, i32) {
    %c0_i32 = arith.constant 0 : i32
    %c0_i32_0 = arith.constant 0 : i32
    return %arg0, %c0_i32 : i32, i32
  }
  func.func @transform_3(%arg0: i32) -> (i32, i32) {
    %c0_i32 = arith.constant 0 : i32
    %c0_i32_0 = arith.constant 0 : i32
    %c0_i32_1 = arith.constant 0 : i32
    return %c0_i32, %c0_i32_0 : i32, i32
  }
  func.func @transform_4(%arg0: i32) -> (i32, i32) {
    %c0_i32 = arith.constant 0 : i32
    %c0_i32_0 = arith.constant 0 : i32
    %c0_i32_1 = arith.constant 0 : i32
    return %c0_i32, %c0_i32_0 : i32, i32
  }
  func.func @transform_5(%arg0: i32) -> (i32, i32) {
    %c0_i32 = arith.constant 0 : i32
    %c0_i32_0 = arith.constant 0 : i32
    %c0_i32_1 = arith.constant 0 : i32
    return %c0_i32, %c0_i32_0 : i32, i32
  }
  func.func @transform_6(%arg0: i32) -> (i32, i32) {
    %c0_i32 = arith.constant 0 : i32
    %c0_i32_0 = arith.constant 0 : i32
    %c0_i32_1 = arith.constant 0 : i32
    return %c0_i32, %c0_i32_0 : i32, i32
  }
  func.func @transform_7(%arg0: i32) -> (i32, i32) {
    %c0_i32 = arith.constant 0 : i32
    %c0_i32_0 = arith.constant 0 : i32
    %c0_i32_1 = arith.constant 0 : i32
    return %c0_i32, %c0_i32_0 : i32, i32
  }
  func.func @transform_8(%arg0: i32) -> (i32, i32) {
    %c0_i32 = arith.constant 0 : i32
    %c0_i32_0 = arith.constant 0 : i32
    %c0_i32_1 = arith.constant 0 : i32
    return %c0_i32, %c0_i32_0 : i32, i32
  }
  func.func @transform_9(%arg0: i32) -> (i32, i32) {
    %c0_i32 = arith.constant 0 : i32
    %c0_i32_0 = arith.constant 0 : i32
    %c0_i32_1 = arith.constant 0 : i32
    return %c0_i32, %c0_i32_0 : i32, i32
  }
  func.func @transform_10(%arg0: i32) -> (i32, i32) {
    %c0_i32 = arith.constant 0 : i32
    %c0_i32_0 = arith.constant 0 : i32
    %c0_i32_1 = arith.constant 0 : i32
    return %c0_i32, %c0_i32_0 : i32, i32
  }
  func.func @transform_11(%arg0: i32) -> (i32, i32) {
    %c0_i32 = arith.constant 0 : i32
    %c0_i32_0 = arith.constant 0 : i32
    %c0_i32_1 = arith.constant 0 : i32
    return %c0_i32, %c0_i32_0 : i32, i32
  }
  func.func @transform_12(%arg0: i32) -> (i32, i32) {
    %c0_i32 = arith.constant 0 : i32
    %c0_i32_0 = arith.constant 0 : i32
    %c0_i32_1 = arith.constant 0 : i32
    return %c0_i32, %c0_i32_0 : i32, i32
  }
  func.func @transform_13(%arg0: i32) -> (i32, i32) {
    %c0_i32 = arith.constant 0 : i32
    %c0_i32_0 = arith.constant 0 : i32
    %c0_i32_1 = arith.constant 0 : i32
    return %c0_i32, %c0_i32_0 : i32, i32
  }
  func.func @transform_14(%arg0: i32) -> (i32, i32) {
    %c0_i32 = arith.constant 0 : i32
    %c0_i32_0 = arith.constant 0 : i32
    %c0_i32_1 = arith.constant 0 : i32
    return %c0_i32, %c0_i32_0 : i32, i32
  }
  func.func @transform_15(%arg0: i32) -> (i32, i32) {
    %c0_i32 = arith.constant 0 : i32
    %c0_i32_0 = arith.constant 0 : i32
    %c0_i32_1 = arith.constant 0 : i32
    return %c0_i32, %c0_i32_0 : i32, i32
  }
  func.func @transform_16(%arg0: i32) -> (i32, i32) {
    %c0_i32 = arith.constant 0 : i32
    %c0_i32_0 = arith.constant 0 : i32
    return %arg0, %c0_i32 : i32, i32
  }
}

</mosaic_0001>

<bundles_post_ra>
// kernel: vae_forward.1
= control target key start
LH: loop header
LB: loop body
LE: loop exit
PB: predicated region body
PF: predicated region fallthrough
CT: control target
= control target key end

     0   :  { %vm81_vm0 = vcmask 261120   ;;  %vm138_vm1 = vcmask 523264   ;;  %s567_s21 = smov 48   ;;  %s569_s22 = smov 32   ;;  %vm285_vm2 = vcmask 130048   ;;  %vm409_vm3 = vcmask 392448   ;;  %s789_s3 = inlined_call_operand.vmem [shape: bf16[32,64], index: 3, kind: input, shape index: {}]   ;;  %s790_s4 = inlined_call_operand.vmem [shape: f32[1,64], index: 4, kind: input, shape index: {}]   ;;  %s791_s0 = inlined_call_operand.vmem [shape: bf16[16,32], index: 0, kind: input, shape index: {}]   ;;  %s792_s6 = inlined_call_operand.vmem [shape: f32[1,32], index: 6, kind: input, shape index: {}]   ;;  %s793_s5 = inlined_call_operand.vmem [shape: bf16[64,32], index: 5, kind: input, shape index: {}]   ;;  %s794_s8 = inlined_call_operand.vmem [shape: f32[1,32], index: 8, kind: input, shape index: {}]   ;;  %s795_s7 = inlined_call_operand.vmem [shape: bf16[32,32], index: 7, kind: input, shape index: {}]   ;;  %s796_s9 = inlined_call_operand.vmem [shape: bf16[64,16], index: 9, kind: input, shape index: {}]   ;;  %s797_s1 = inlined_call_operand.vmem [shape: bf16[16,64], index: 1, kind: input, shape index: {}]   ;;  %s798_s10 = inlined_call_operand.vmem [shape: bf16[16,32], index: 10, kind: input, shape index: {}]   ;;  %s799_s2 = inlined_call_operand.vmem [shape: f32[16,16], index: 2, kind: input, shape index: {}]   ;;  %s800_s11 = inlined_call_operand.vmem [shape: f32[1,32], index: 11, kind: input, shape index: {}]   ;;  %s801_s13 = inlined_call_operand.vmem [shape: f32[1,64], index: 13, kind: input, shape index: {}]   ;;  %s802_s12 = inlined_call_operand.vmem [shape: bf16[32,64], index: 12, kind: input, shape index: {}]   ;;  %s803_s14 = inlined_call_operand.vmem [shape: bf16[64,32], index: 14, kind: input, shape index: {}]   ;;  %s804_s15 = inlined_call_operand.vmem [shape: f32[1,32], index: 15, kind: input, shape index: {}]   ;;  %s805_s16 = inlined_call_operand.vmem [shape: f32[16,128], index: 16, kind: output, shape index: {}]  }
   0x1   :  { %807 = sst [smem:[#allocation2_spill]] %s789_s3  ;;  %v532_v2 = vld [vmem:[%s791_s0] sm:$0xff]  ;;  %v538_v3 = vld [vmem:[%s793_s5 + $0x18] sm:$0xff]  ;;  %v537_v4 = vld [vmem:[%s793_s5 + $0x10] sm:$0xff]  ;;  %vm420_vm4 = vcmask 523648   ;;  %vm431_vm5 = vcmask 654848  }
   0x2   :  { %s808_s23 = sld [smem:[#allocation2_spill]]  ;;  %146 = vmatpush.bf16.msra.mxu1 %v538_v3  ;;  %v536_v5 = vld [vmem:[%s793_s5 + $0x8] sm:$0xff]  ;;  %v535_v6 = vld [vmem:[%s793_s5] sm:$0xff]  ;;  %v545_v17 = vld [vmem:[%s796_s9 + $0x18] sm:$0xff]  ;;  %vm434_vm6 = vcmask 1048192  }
   0x3   :  { %v557_v8 = vld [vmem:[%s790_s4] ss:$0 sm:$0xff]  ;;  %v540_v15 = vld [vmem:[%s795_s7 + $0x8] sm:$0xff]  ;;  %242 = vmatpush.bf16.msra.mxu3 %v545_v17  ;;  %v544_v18 = vld [vmem:[%s796_s9 + $0x10] sm:$0xff] }
   0x4   :  { %188 = vmatpush.bf16.msra.mxu2 %v540_v15  ;;  %v539_v16 = vld [vmem:[%s795_s7] sm:$0xff]  ;;  %v543_v19 = vld [vmem:[%s796_s9 + $0x8] sm:$0xff]  ;;  %v552_v55 = vld [vmem:[%s803_s14 + $0x18] sm:$0xff] }
   0x5   :  { %v542_v20 = vld [vmem:[%s796_s9] sm:$0xff]  ;;  %v253_v48 = vld [vmem:[%s799_s2 + $0x8] sm:$0xff] }
   0x6   :  { %147 = vmatpush.bf16.msra.mxu1 %v537_v4  ;;  %v541_v21 = vld [vmem:[%s797_s1] sm:$0xff]  ;;  %v548_v53 = vld [vmem:[%s802_s12 + $0x8] sm:$0xff] }
   0x7   :  { %243 = vmatpush.bf16.msra.mxu3 %v544_v18  ;;  %v558_v23 = vld [vmem:[%s792_s6] ss:$0 sm:$0xff]  ;;  %s568_s6 = smov 112   ;;  %v570_v18 = vmov 0.0  }
   0x8   :  { %v534_v0 = vld [vmem:[%s808_s23 + $0x8] sm:$0xff]  ;;  %v533_v1 = vld [vmem:[%s808_s23] sm:$0xff]  ;;  %189 = vmatpush.bf16.msra.mxu2 %v539_v16 }
   0x9   :  { %91 = vmatpush.bf16.msra.mxu0 %v534_v0  ;;  %v559_v30 = vld [vmem:[%s794_s8] ss:$0 sm:$0xff]  ;;  %v551_v0 = vld [vmem:[%s803_s14 + $0x10] sm:$0xff] }
   0xa   :  { %148 = vmatpush.bf16.msra.mxu1 %v536_v5  ;;  %v546_v32 = vld [vmem:[%s798_s10] sm:$0xff] }
   0xb   :  { %244 = vmatpush.bf16.msra.mxu3 %v543_v19  ;;  %v252_v44 = vld [vmem:[%s799_s2] sm:$0xff] }
   0xc   :  { %335 = vmatpush.bf16.msrb.mxu2 %v548_v53  ;;  %v547_v54 = vld [vmem:[%s802_s12] sm:$0xff] }
   0xd   :  { %92 = vmatpush.bf16.msra.mxu0 %v533_v1  ;;  %v560_v57 = vld [vmem:[%s800_s11] ss:$0 sm:$0xff]  ;;  %v550_v1 = vld [vmem:[%s803_s14 + $0x8] sm:$0xff] }
   0xe   :  { %149 = vmatpush.bf16.msra.mxu1 %v535_v6  ;;  %v561_v4 = vld [vmem:[%s801_s13] ss:$0 sm:$0xff] }
   0xf   :  { %245 = vmatpush.bf16.msra.mxu3 %v542_v20 }
  0x10   :  { %453 = vmatmul.msk.bf16.vlgmr.msra.gmra.mxu0 %vm81_vm0, %v532_v2  ;;  %336 = vmatpush.bf16.msrb.mxu2 %v547_v54  ;;  %v549_v2 = vld [vmem:[%s803_s14] sm:$0xff] }
  0x11   :  { %296 = vmatpush.bf16.msrb.mxu0 %v546_v32 }
  0x12   :  { %500 = vmatmul.msk.bf16.vlgmr.msra.gmra.mxu3 %vm138_vm1, %v541_v21  ;;  %389 = vmatpush.bf16.msrb.mxu1 %v552_v55 }
  0x16   :  { %390 = vmatpush.bf16.msrb.mxu1 %v551_v0 }
  0x1a   :  { %391 = vmatpush.bf16.msrb.mxu1 %v550_v1 }
  0x1e   :  { %392 = vmatpush.bf16.msrb.mxu1 %v549_v2 }
  0x8d   :  { %v94_v7 = vpop.f32.mrf.mxu0 }
  0x8e   :  { %v95_v9 = vadd.f32 %v557_v8, %v94_v7 }
  0x90   :  { %v99_v12 = vmax.f32 %v95_v9, 0.0 }
  0x95   :  { %v96_v10 = vpop.f32.mrf.mxu0  ;;  %v247_v31 = vpop.f32.mrf.mxu3 }
  0x96   :  { %v97_v11 = vadd.f32 %v557_v8, %v96_v10  ;;  %414 = vrot.lane.b32.xlu2 %v247_v31, %s567_s21 }
  0x98   :  { %v100_v13 = vmax.f32 %v97_v11, 0.0 }
  0x9a   :  { %v101_v14 = vpack.c.bf16 %v100_v13, %v99_v12  ;;  %v562_v12 = vld [vmem:[%s804_s15] ss:$0 sm:$0xff] }
  0x9c   :  { %470 = vmatmul.msk.bf16.vlgmr.msra.gmra.mxu1 %vm138_vm1, %v101_v14 }
  0x9d   :  { %v249_v43 = vpop.f32.mrf.mxu3 }
  0x9e   :  { %416 = vrot.lane.b32.xlu2 %v249_v43, %s567_s21 }
  0xf0   :  { %v415_v15 = vpop.permute.xlu2 %414 }
  0xf8   :  { %v417_v21 = vpop.permute.xlu2 %416 }
 0x119   :  { %v151_v22 = vpop.f32.mrf.mxu1 }
 0x11a   :  { %v152_v24 = vadd.f32 %v558_v23, %v151_v22 }
 0x11c   :  { %v156_v27 = vmax.f32 %v152_v24, 0.0 }
 0x121   :  { %v153_v25 = vpop.f32.mrf.mxu1 }
 0x122   :  { %v154_v26 = vadd.f32 %v558_v23, %v153_v25 }
 0x124   :  { %v157_v28 = vmax.f32 %v154_v26, 0.0 }
 0x126   :  { %v158_v29 = vpack.c.bf16 %v157_v28, %v156_v27 }
 0x128   :  { %479 = vmatmul.msk.bf16.vlgmr.msra.gmra.mxu2 %vm81_vm0, %v158_v29 }
 0x1ab   :  { %v191_v33 = vpop.f32.mrf.mxu2 }
 0x1ac   :  { %v192_v34 = vadd.f32 %v559_v30, %v191_v33 }
 0x1ae   :  { %v254_v35 = vmul.f32 0.5, %v192_v34 }
 0x1b0   :  { %v256_v36 = vmul.f32 1.442695, %v254_v35 }
 0x1b2   :  { %563 = vpow2.f32 %v256_v36 }
 0x1b3   :  { %v193_v37 = vpop.f32.mrf.mxu2 }
 0x1b4   :  { %v194_v38 = vadd.f32 %v559_v30, %v193_v37 }
 0x1b6   :  { %v255_v39 = vmul.f32 0.5, %v194_v38 }
 0x1b8   :  { %v564_v40 = vpop.eup %563  ;;  %v258_v41 = vmul.f32 1.442695, %v255_v39 }
 0x1b9   :  { %262 = vrot.lane.b32.xlu0 %v564_v40, %s568_s6 }
 0x1ba   :  { %565 = vpow2.f32 %v258_v41 }
 0x1c0   :  { %v566_v42 = vpop.eup %565 }
 0x1c1   :  { %264 = vrot.lane.b32.xlu0 %v566_v42, %s568_s6 }
 0x1c9   :  { %425 = vrot.lane.b32.xlu0 %v192_v34, %s567_s21 }
 0x22b   :  { %v263_v45 = vpop.permute.xlu0 %262 }
 0x22c   :  { %v268_v46 = vmul.f32 %v263_v45, %v252_v44 }
 0x22e   :  { %v270_v47 = vadd.f32 %v268_v46, %v247_v31 }
 0x230   :  { %403 = vrot.lane.b32.xlu1 %v270_v47, %s569_s22 }
 0x233   :  { %v265_v49 = vpop.permute.xlu0 %264 }
 0x234   :  { %v269_v50 = vmul.f32 %v265_v49, %v253_v48 }
 0x236   :  { %v271_v51 = vadd.f32 %v269_v50, %v249_v43 }
 0x238   :  { %v272_v52 = vpack.c.bf16 %v271_v51, %v270_v47  ;;  %405 = vrot.lane.b32.xlu1 %v271_v51, %s569_s22 }
 0x23a   :  { %505 = vmatmul.msk.bf16.vlgmr.msrb.gmra.mxu0 %vm285_vm2, %v272_v52 }
 0x23b   :  { %v426_v17 = vpop.permute.xlu0 %425 }
 0x240   :  { %427 = vrot.lane.b32.xlu1 %v194_v38, %s567_s21 }
 0x2a2   :  { %v404_v11 = vpop.permute.xlu1 %403 }
 0x2aa   :  { %v406_v16 = vpop.permute.xlu1 %405 }
 0x2b2   :  { %v428_v22 = vpop.permute.xlu1 %427 }
 0x2b7   :  { %v298_v56 = vpop.f32.mrf.mxu0 }
 0x2b8   :  { %v299_v58 = vadd.f32 %v560_v57, %v298_v56 }
 0x2ba   :  { %v303_v61 = vmax.f32 %v299_v58, 0.0 }
 0x2bf   :  { %v300_v59 = vpop.f32.mrf.mxu0 }
 0x2c0   :  { %v301_v60 = vadd.f32 %v560_v57, %v300_v59 }
 0x2c2   :  { %v304_v62 = vmax.f32 %v301_v60, 0.0 }
 0x2c4   :  { %v305_v63 = vpack.c.bf16 %v304_v62, %v303_v61 }
 0x2c6   :  { %514 = vmatmul.msk.bf16.vlgmr.msrb.gmra.mxu2 %vm81_vm0, %v305_v63 }
 0x349   :  { %v338_v3 = vpop.f32.mrf.mxu2 }
 0x34a   :  { %v339_v5 = vadd.f32 %v561_v4, %v338_v3 }
 0x34c   :  { %v343_v8 = vmax.f32 %v339_v5, 0.0 }
 0x351   :  { %v340_v6 = vpop.f32.mrf.mxu2 }
 0x352   :  { %v341_v7 = vadd.f32 %v561_v4, %v340_v6 }
 0x354   :  { %v344_v9 = vmax.f32 %v341_v7, 0.0 }
 0x356   :  { %v345_v10 = vpack.c.bf16 %v344_v9, %v343_v8 }
 0x358   :  { %531 = vmatmul.msk.bf16.vlgmr.msrb.gmra.mxu1 %vm138_vm1, %v345_v10 }
 0x3d5   :  { %v394_v13 = vpop.f32.mrf.mxu1 }
 0x3d6   :  { %v395_v14 = vadd.f32 %v562_v12, %v394_v13 }
 0x3d8   :  { %399 = vst.msk [vmem:[%s805_s16] sm:$0xff] %vm81_vm0, %v395_v14 }
 0x3d9   :  { %410 = vst.msk [vmem:[%s805_s16] sm:$0xff] %vm409_vm3, %v404_v11 }
 0x3da   :  { %421 = vst.msk [vmem:[%s805_s16] sm:$0xff] %vm420_vm4, %v415_v15 }
 0x3db   :  { %432 = vst.msk [vmem:[%s805_s16] sm:$0xff] %vm431_vm5, %v426_v17 }
 0x3dc   :  { %435 = vst.msk [vmem:[%s805_s16] sm:$0xff] %vm434_vm6, %v570_v18 }
 0x3dd   :  { %v396_v19 = vpop.f32.mrf.mxu1 }
 0x3de   :  { %v397_v20 = vadd.f32 %v562_v12, %v396_v19 }
 0x3e0   :  { %400 = vst.msk [vmem:[%s805_s16 + $0x8] sm:$0xff] %vm81_vm0, %v397_v20 }
 0x3e1   :  { %411 = vst.msk [vmem:[%s805_s16 + $0x8] sm:$0xff] %vm409_vm3, %v406_v16 }
 0x3e2   :  { %422 = vst.msk [vmem:[%s805_s16 + $0x8] sm:$0xff] %vm420_vm4, %v417_v21 }
 0x3e3   :  { %433 = vst.msk [vmem:[%s805_s16 + $0x8] sm:$0xff] %vm431_vm5, %v428_v22 }
 0x3e4   :  { %436 = vst.msk [vmem:[%s805_s16 + $0x8] sm:$0xff] %vm434_vm6, %v570_v18 }

</bundles_post_ra>
